<compile_context>
chip_gen: v7x
topology: tpu7x:2x2x1
jax: 0.10.0
libtpu: 0.0.40
codegen_flags: <defaults>
</compile_context>

<pallas_src>
import functools

import jax
import jax.numpy as jnp
from jax.experimental import pallas as pl
from jax.experimental.pallas import tpu as pltpu


# ---------------------------------------------------------------------------
# Kernels
# ---------------------------------------------------------------------------

def _sigmoid(z):
    # exp on the EUP; approx reciprocal also on the EUP (free slot in this
    # mem-bound kernel, and no VALU Newton steps).
    return pl.reciprocal(1.0 + jnp.exp(-z), approx=True)


def _logistic_kernel_single_k(x_ref, w_ref, b_ref, o_ref):
    """in_dim fits in one K block: matmul + bias + sigmoid in one shot."""
    z = jnp.dot(x_ref[...], w_ref[...], preferred_element_type=jnp.float32)
    z = z + b_ref[...].astype(jnp.float32)
    o_ref[...] = _sigmoid(z).astype(o_ref.dtype)


def _logistic_kernel_multi_k(x_ref, w_ref, b_ref, o_ref, acc_ref, *,
                             num_k, block_k, k_rem):
    """in_dim is tiled: accumulate partial products; epilogue on the last K step."""
    k = pl.program_id(2)

    @pl.when(k == 0)
    def _():
        acc_ref[...] = jnp.zeros_like(acc_ref)

    x = x_ref[...]
    if k_rem:  # static: only emitted when in_dim % block_k != 0 (mask padded K cols)
        col = jax.lax.broadcasted_iota(jnp.int32, x.shape, 1)
        valid = jnp.where(k == num_k - 1, jnp.int32(k_rem), jnp.int32(block_k))
        x = jnp.where(col < valid, x, jnp.zeros_like(x))

    acc_ref[...] += jnp.dot(x, w_ref[...], preferred_element_type=jnp.float32)

    @pl.when(k == num_k - 1)
    def _():
        z = acc_ref[...] + b_ref[...].astype(jnp.float32)
        o_ref[...] = _sigmoid(z).astype(o_ref.dtype)


# ---------------------------------------------------------------------------
# Tile sizing
# ---------------------------------------------------------------------------

def _round_up(v, m):
    return -(-v // m) * m


def _physical_vmem_bytes():
    """Per-generation physical VMEM (128 MiB v5e/v6e, 64 MiB v7x); safe fallback."""
    try:
        info = pltpu.get_tpu_info()
        for name in ("vmem_capacity_bytes", "vmem_size_bytes", "vmem_bytes"):
            v = getattr(info, name, None)
            if v:
                return int(v)
    except Exception:
        pass
    return 64 * 1024 * 1024  # conservative default (v7x per-TensorCore)


def _choose_tiles(B, in_dim, out_dim, x_itemsize, w_itemsize, o_itemsize, budget):
    """Pick (block_b, block_n, block_k) so padded, double-buffered tiles fit budget."""
    p128 = lambda v: _round_up(v, 128)
    p8 = lambda v: _round_up(v, 8)

    # --- N (out_dim) tile: lane-dense, multiple of 256 (MXU-shaped) when tiled ----
    block_n = out_dim if p128(out_dim) <= 2048 else 2048

    def w_footprint(bk, bn):
        # weight + bias, double-buffered (default pipelining), padded vreg layout.
        return 2 * p8(bk) * p128(bn) * w_itemsize + 2 * 8 * p128(bn) * 4

    # --- K (in_dim) tile: keep weights fully resident if they fit half the budget -
    w_budget = budget // 2
    if w_footprint(in_dim, block_n) <= w_budget:
        block_k = in_dim
    else:
        bk = (w_budget - 2 * 8 * p128(block_n) * 4) // max(2 * p128(block_n) * w_itemsize, 1)
        block_k = max(128, (bk // 128) * 128)      # must be a multiple of 128 when tiled
        if block_k >= in_dim:
            block_k = in_dim

    # --- B (batch) tile from whatever budget remains -------------------------------
    remaining = max(budget - w_footprint(block_k, block_n), budget // 4)
    per_row = 2 * p128(block_k) * x_itemsize + 2 * p128(block_n) * o_itemsize
    if block_k < in_dim:
        per_row += p128(block_n) * 4               # f32 accumulator scratch (1 buffer)
    tb = remaining // max(per_row, 1)
    tb = min(tb, 2048)                             # 512-2048 rows amortize ~0.35us/step
    if B > 64:
        # Keep >= ~4 batch steps when B allows: megacore sharding + DMA overlap (v7x).
        tb = min(tb, _round_up(pl.cdiv(B, 4), 16))
    if tb >= B:
        block_b = B
    else:
        block_b = max(16, (tb // 16) * 16)         # multiple of 8 required; 16 is bf16-safe
        block_b = min(block_b, B)
    return block_b, block_n, block_k


# ---------------------------------------------------------------------------
# Public wrapper
# ---------------------------------------------------------------------------

def logistic_regressor_forward(x, w, b, *, out_dtype=None,
                               block_b=None, block_n=None, block_k=None):
    """x: (B, in_dim), w: (in_dim, out_dim), b: (1, out_dim) -> sigmoid(x @ w + b).

    Inputs are consumed in the caller's dtype (store x/w in bf16 to halve HBM
    traffic); MXU accumulation and the epilogue are f32.  Manual block_* overrides
    must respect Pallas tiling rules (multiples of 8/128 unless equal to full dim).
    """
    B, in_dim = x.shape
    k_dim, out_dim = w.shape
    assert k_dim == in_dim and b.shape == (1, out_dim)
    out_dtype = jnp.dtype(out_dtype) if out_dtype is not None else x.dtype

    b = b.astype(jnp.float32)  # tiny; keep bias / epilogue math in f32

    cap = _physical_vmem_bytes()
    budget = cap // 2                       # our pipelined tiles
    vmem_limit = (cap * 3) // 4             # headroom for compiler internals

    auto_b, auto_n, auto_k = _choose_tiles(
        B, in_dim, out_dim,
        x.dtype.itemsize, w.dtype.itemsize, jnp.dtype(out_dtype).itemsize, budget)
    block_b = auto_b if block_b is None else block_b
    block_n = auto_n if block_n is None else block_n
    block_k = auto_k if block_k is None else block_k

    nb = pl.cdiv(B, block_b)
    nn = pl.cdiv(out_dim, block_n)
    nk = pl.cdiv(in_dim, block_k)
    grid = (nb, nn, nk)

    if nk == 1:
        kernel = _logistic_kernel_single_k
        scratch_shapes = ()
    else:
        kernel = functools.partial(
            _logistic_kernel_multi_k,
            num_k=nk, block_k=block_k, k_rem=in_dim % block_k)
        scratch_shapes = (pltpu.VMEM((block_b, block_n), jnp.float32),)

    w_reads = nb if (nn * nk) > 1 else 1
    cost = pl.CostEstimate(
        flops=2 * B * in_dim * out_dim + 2 * B * out_dim,
        transcendentals=B * out_dim,
        bytes_accessed=(x.size * x.dtype.itemsize
                        + w_reads * w.size * w.dtype.itemsize
                        + b.size * 4
                        + B * out_dim * jnp.dtype(out_dtype).itemsize),
    )

    out = pl.pallas_call(
        kernel,
        out_shape=jax.ShapeDtypeStruct((B, out_dim), out_dtype),
        grid=grid,
        in_specs=[
            pl.BlockSpec((block_b, block_k), lambda i, j, k: (i, k)),  # x: streamed
            pl.BlockSpec((block_k, block_n), lambda i, j, k: (k, j)),  # W
            pl.BlockSpec((1, block_n), lambda i, j, k: (0, j)),        # bias
        ],
        out_specs=pl.BlockSpec((block_b, block_n), lambda i, j, k: (i, j)),
        scratch_shapes=scratch_shapes,
        compiler_params=pltpu.CompilerParams(
            dimension_semantics=("parallel", "parallel", "arbitrary"),
            vmem_limit_bytes=int(vmem_limit),
        ),
        cost_estimate=cost,
    )(x, w, b)
    return out


def init_params(key, in_dim, out_dim):
    """Mimics torch.nn.Linear default init: uniform +/- 1/sqrt(fan_in)."""
    k1, k2 = jax.random.split(key)
    bound = 1.0 / jnp.sqrt(jnp.float32(in_dim))
    w = jax.random.uniform(k1, (in_dim, out_dim), jnp.float32, -bound, bound)
    b = jax.random.uniform(k2, (1, out_dim), jnp.float32, -bound, bound)
    return w, b


if __name__ == "__main__":
    key = jax.random.PRNGKey(0)
    kx, kp, kx2, kp2 = jax.random.split(key, 4)

    # Small probe-sized check (matches the module: Linear(in_dim, out_dim) -> Sigmoid).
    B, in_dim, out_dim = 8, 16, 4
    x = jax.random.normal(kx, (B, in_dim), jnp.float32)
    w, b = init_params(kp, in_dim, out_dim)

    out = jax.block_until_ready(logistic_regressor_forward(x, w, b))
    ref = 1.0 / (1.0 + jnp.exp(-(x @ w + b)))
    assert out.shape == (B, out_dim)
    assert jnp.allclose(out, ref, atol=2e-3, rtol=2e-3), float(jnp.max(jnp.abs(out - ref)))

    # Exercise the K-tiled (accumulator) fallback path with an explicit tile override.
    B2, in2, out2 = 16, 256, 8
    x2 = jax.random.normal(kx2, (B2, in2), jnp.float32)
    w2, b2 = init_params(kp2, in2, out2)
    out2 = jax.block_until_ready(logistic_regressor_forward(x2, w2, b2, block_k=128))
    ref2 = 1.0 / (1.0 + jnp.exp(-(x2 @ w2 + b2)))
    assert out2.shape == (B2, out2.shape[1])
    assert jnp.allclose(out2, ref2, atol=2e-3, rtol=2e-3), float(jnp.max(jnp.abs(out2 - ref2)))

    print("KERNEL_OK")
</pallas_src>

<mosaic_0001>
module attributes {stable_mosaic.version = 11 : i64} {
  func.func @_logistic_kernel_single_k(%arg0: i32, %arg1: i32, %arg2: i32, %arg3: memref<8x16xf32, #tpu.memory_space<vmem>>, %arg4: memref<16x4xf32, #tpu.memory_space<vmem>>, %arg5: memref<1x4xf32, #tpu.memory_space<vmem>>, %arg6: memref<8x4xf32, #tpu.memory_space<vmem>>) attributes {dimension_semantics = [#tpu.dimension_semantics<parallel>, #tpu.dimension_semantics<parallel>, #tpu.dimension_semantics<arbitrary>], iteration_bounds = array<i64: 1, 1, 1>, scalar_prefetch = 0 : i64, scratch_operands = 0 : i64, tpu.core_type = #tpu.core_type<tc>, window_params = [{transform_indices = @transform_0, window_bounds = array<i64: 8, 16>}, {transform_indices = @transform_1, window_bounds = array<i64: 16, 4>}, {transform_indices = @transform_2, window_bounds = array<i64: 1, 4>}, {transform_indices = @transform_3, window_bounds = array<i64: 8, 4>}]} {
    %c0 = arith.constant 0 : index
    %c0_0 = arith.constant 0 : index
    %0 = vector.load %arg3[%c0, %c0_0] : memref<8x16xf32, #tpu.memory_space<vmem>>, vector<8x16xf32>
    %c0_1 = arith.constant 0 : index
    %c0_2 = arith.constant 0 : index
    %1 = vector.load %arg4[%c0_1, %c0_2] : memref<16x4xf32, #tpu.memory_space<vmem>>, vector<16x4xf32>
    %cst = arith.constant dense<0.000000e+00> : vector<8x4xf32>
    %2 = tpu.matmul %0, %1, %cst {dimension_numbers = #tpu.dot_dimension_numbers<[1], [0], [0], [1], [0, 0, 1, 1], [], []>} : vector<8x16xf32>, vector<16x4xf32>, vector<8x4xf32> -> vector<8x4xf32>
    %c0_3 = arith.constant 0 : index
    %c0_4 = arith.constant 0 : index
    %3 = vector.load %arg5[%c0_3, %c0_4] : memref<1x4xf32, #tpu.memory_space<vmem>>, vector<1x4xf32>
    %4 = vector.broadcast %3 : vector<1x4xf32> to vector<8x4xf32>
    %5 = arith.addf %2, %4 : vector<8x4xf32>
    %cst_5 = arith.constant 0.000000e+00 : f32
    %6 = vector.broadcast %cst_5 : f32 to vector<8x4xf32>
    %7 = arith.subf %6, %5 : vector<8x4xf32>
    %8 = math.exp %7 : vector<8x4xf32>
    %cst_6 = arith.constant 1.000000e+00 : f32
    %9 = vector.broadcast %cst_6 : f32 to vector<8x4xf32>
    %10 = arith.addf %9, %8 : vector<8x4xf32>
    %11 = tpu.reciprocal %10 {approx = true} : vector<8x4xf32> -> vector<8x4xf32>
    %c0_7 = arith.constant 0 : index
    %c0_8 = arith.constant 0 : index
    %12 = vector.load %arg6[%c0_7, %c0_8] : memref<8x4xf32, #tpu.memory_space<vmem>>, vector<8x4xf32>
    tpu.vector_store %arg6[%c0_7, %c0_8], %11 {strides = array<i32>} : memref<8x4xf32, #tpu.memory_space<vmem>>, vector<8x4xf32>,
    return
  }
  func.func @transform_0(%arg0: i32, %arg1: i32, %arg2: i32) -> (i32, i32) {
    %c0_i32 = arith.constant 0 : i32
    return %arg0, %arg2 : i32, i32
  }
  func.func @transform_1(%arg0: i32, %arg1: i32, %arg2: i32) -> (i32, i32) {
    %c0_i32 = arith.constant 0 : i32
    return %arg2, %arg1 : i32, i32
  }
  func.func @transform_2(%arg0: i32, %arg1: i32, %arg2: i32) -> (i32, i32) {
    %c0_i32 = arith.constant 0 : i32
    %c0_i32_0 = arith.constant 0 : i32
    return %c0_i32, %arg1 : i32, i32
  }
  func.func @transform_3(%arg0: i32, %arg1: i32, %arg2: i32) -> (i32, i32) {
    %c0_i32 = arith.constant 0 : i32
    return %arg0, %arg1 : i32, i32
  }
}

</mosaic_0001>

<bundles_post_ra>
// kernel: tpu_custom_call.1
= control target key start
LH: loop header
LB: loop body
LE: loop exit
PB: predicated region body
PF: predicated region fallthrough
CT: control target
= control target key end

     0   :  { %v131_v0 = vmov 0.0|0.0   ;;  %vm132_vm0 = vmmov 0   ;;  %v133_v3 = vmov 0.0   ;;  %vm24_vm1 = vcmask 130048   ;;  %s169_s1 = inlined_call_operand.vmem [shape: f32[16,4], index: 1, kind: input, shape index: {}]   ;;  %s170_s0 = inlined_call_operand.vmem [shape: f32[8,16], index: 0, kind: input, shape index: {}]   ;;  %s171_s2 = inlined_call_operand.vmem [shape: f32[1,4], index: 2, kind: input, shape index: {}]   ;;  %s172_s3 = inlined_call_operand.vmem [shape: f32[8,4], index: 3, kind: output, shape index: {}]  }
   0x1   :  { %121 = vmatprep.subr.bf16.mxu0 %v131_v0  ;;  %v15_v1 = vld [vmem:[%s169_s1] sm:$0xff]  ;;  %v16_v2 = vld [vmem:[%s169_s1 + $0x8] sm:$0xff]  ;;  %118 = vmatprep.mubr.msk.f32.mxu0 %vm132_vm0, %v133_v3  ;;  %vm103_vm2 = vcmask 31744  }
   0x2   :  { %v122_v4 = vpack.c.bf16 %v16_v2, %v15_v1  ;;  %v14_v5 = vld [vmem:[%s170_s0] sm:$0xff] }
   0x3   :  { %v109_v6 = vld [vmem:[%s171_s2] ss:$0 sm:$0xff] }
   0x4   :  { %123 = vmatpush3.bf16.msra.mxu0 %v122_v4 }
   0x7   :  { %119 = vmatmul.mubr.msk.f32.vlgmr.msra.gmra.mrb[0].mxu0 %vm24_vm1, %v14_v5 }
  0xda   :  { %v94_v7 = vpop.f32.mrb[0].mxu0 }
  0xdb   :  { %v95_v8 = vadd.f32 %v109_v6, %v94_v7  ;;  %v120_v9 = vpop.f32.mrb[1].mxu0 }
  0xdd   :  { %v98_v10 = vsub.f32 0.0, %v95_v8 }
  0xdf   :  { %v99_v11 = vmul.f32 1.442695, %v98_v10 }
  0xe1   :  { %127 = vpow2.f32 %v99_v11 }
  0xeb   :  { %v128_v12 = vpop.eup %127 }
  0xec   :  { %v101_v13 = vadd.f32 1.0, %v128_v12 }
  0xee   :  { %129 = vrcp.f32 %v101_v13 }
  0xf8   :  { %v130_v14 = vpop.eup %129 }
  0xf9   :  { %104 = vst.msk [vmem:[%s172_s3] sm:$0xff] %vm103_vm2, %v130_v14 }

</bundles_post_ra>
